<compile_context>
chip_gen: v6e
topology: v6e:2x2x1
jax: 0.10.0
libtpu: 0.0.40
codegen_flags: <defaults>
</compile_context>

<pallas_src>
import functools

import jax
import jax.numpy as jnp
from jax.experimental import pallas as pl
from jax.experimental.pallas import tpu as pltpu


def compared_network_kernel(
    o1_ref, o2_ref,
    w1a_ref, w1b_ref, b1_ref,
    w2_ref, b2_ref,
    w3_ref, b3_ref,
    w4_ref, b4_ref,
    out_ref,
):
    # bf16 MXU feeds, f32 accumulation; bias + ReLU in f32.
    o1 = o1_ref[...].astype(jnp.bfloat16)
    o2 = o2_ref[...].astype(jnp.bfloat16)

    # Layer 1 (fused concat): (TB,256)@(256,256) + (TB,256)@(256,256) + b1
    h = (
        jnp.dot(o1, w1a_ref[...], preferred_element_type=jnp.float32)
        + jnp.dot(o2, w1b_ref[...], preferred_element_type=jnp.float32)
        + b1_ref[...]
    )
    h = jnp.maximum(h, 0.0).astype(jnp.bfloat16)

    # Layer 2: (TB,256) -> (TB,128)
    h = jnp.dot(h, w2_ref[...], preferred_element_type=jnp.float32) + b2_ref[...]
    h = jnp.maximum(h, 0.0).astype(jnp.bfloat16)

    # Layer 3 (lane-dense padded): (TB,128) -> (TB,128); cols 64: stay exactly 0
    h = jnp.dot(h, w3_ref[...], preferred_element_type=jnp.float32) + b3_ref[...]
    h = jnp.maximum(h, 0.0).astype(jnp.bfloat16)

    # Layer 4 (narrow padded logits): (TB,128) -> (TB,8); cols 2: are 0
    out_ref[...] = (
        jnp.dot(h, w4_ref[...], preferred_element_type=jnp.float32) + b4_ref[...]
    )


def _choose_tb(B, tb_max):
    """Pick the batch tile.

    - small batch  -> a single block equal to the full batch (always legal);
    - large batch  -> a multiple of 256 rows, capped both by tb_max (VMEM
      budget) and by ~B/8 (keep >= ~8 grid steps for v7x megacore sharding and
      input/output double-buffering overlap).
    """
    if B <= 256:
        return B
    per_step = -(-B // 8)                       # ceil(B / 8)
    per_step = ((per_step + 255) // 256) * 256  # round up to multiple of 256
    return max(256, min(tb_max, per_step))


@functools.partial(jax.jit, static_argnames=("tb",))
def compared_network_forward(output1, output2, params, *, tb=2048):
    """output1, output2: (B, 256) float32 or bfloat16. Returns (B, 2) f32 logits."""
    B = output1.shape[0]
    w1, b1, w2, b2, w3, b3, w4, b4 = params

    # --- batch tiling (no wrapper pad: ragged last block is clipped) --------
    TB = _choose_tb(B, tb)
    grid = (pl.cdiv(B, TB),)

    # --- weight prep (done once under jit; tiny) ----------------------------
    # Split W1 along its input dim to fuse the concat into two matmuls.
    w1a = w1[:256, :].astype(jnp.bfloat16)     # multiplies output1
    w1b = w1[256:, :].astype(jnp.bfloat16)     # multiplies output2
    w2b = w2.astype(jnp.bfloat16)
    # Lane-dense hidden tail: pad W3 (128,64)->(128,128); narrow logits head:
    # pad W4 (64,2)->(128,8) so the output block is (TB,8) = full last dim.
    w3p = jnp.zeros((128, 128), jnp.bfloat16).at[:, :64].set(
        w3.astype(jnp.bfloat16))
    w4p = jnp.zeros((128, 8), jnp.bfloat16).at[:64, :2].set(
        w4.astype(jnp.bfloat16))

    # Biases in f32 (padded with zeros where needed).
    b1r = b1.reshape(1, 256).astype(jnp.float32)
    b2r = b2.reshape(1, 128).astype(jnp.float32)
    b3r = jnp.zeros((1, 128), jnp.float32).at[0, :64].set(b3.astype(jnp.float32))
    b4r = jnp.zeros((1, 8), jnp.float32).at[0, :2].set(b4.astype(jnp.float32))

    # --- specs ---------------------------------------------------------------
    batch_spec = pl.BlockSpec((TB, 256), lambda i: (i, 0))
    resident = lambda shape: pl.BlockSpec(shape, lambda i: (0, 0))
    in_specs = [
        batch_spec,                 # output1
        batch_spec,                 # output2
        resident((256, 256)),       # w1a (bf16)
        resident((256, 256)),       # w1b (bf16)
        resident((1, 256)),         # b1  (f32)
        resident((256, 128)),       # w2  (bf16)
        resident((1, 128)),         # b2  (f32)
        resident((128, 128)),       # w3 padded (bf16)
        resident((1, 128)),         # b3 padded (f32)
        resident((128, 8)),         # w4 padded (bf16)
        resident((1, 8)),           # b4 padded (f32)
    ]
    out_specs = pl.BlockSpec((TB, 8), lambda i: (i, 0))

    # Compiler params: megacore-parallel batch axis; raise the scoped VMEM
    # limit only when the big tile needs it (v5e default scoped limit = 16 MiB).
    cp_kwargs = dict(dimension_semantics=("parallel",))
    if TB > 1024:
        cp_kwargs["vmem_limit_bytes"] = 32 * 1024 * 1024
    compiler_params = pltpu.CompilerParams(**cp_kwargs)

    # Advisory cost estimate (real batch, padded feature dims).
    in_itemsize = jnp.dtype(output1.dtype).itemsize
    flops = 2 * B * (512 * 256 + 256 * 128 + 128 * 128 + 128 * 8)
    bytes_accessed = (
        2 * B * 256 * in_itemsize                             # inputs
        + B * 8 * 4                                           # output (f32)
        + (2 * 256 * 256 + 256 * 128 + 128 * 128 + 128 * 8) * 2   # bf16 weights
        + (256 + 2 * 128 + 8) * 4                             # f32 biases
    )

    out = pl.pallas_call(
        compared_network_kernel,
        out_shape=jax.ShapeDtypeStruct((B, 8), jnp.float32),
        grid=grid,
        in_specs=in_specs,
        out_specs=out_specs,
        compiler_params=compiler_params,
        cost_estimate=pl.CostEstimate(
            flops=flops, transcendentals=0, bytes_accessed=bytes_accessed),
    )(output1, output2, w1a, w1b, b1r, w2b, b2r, w3p, b3r, w4p, b4r)

    # Keep only the 2 real logits.
    return out[:, :2]


def init_params(key):
    """Deterministic init mimicking torch.nn.Linear defaults:
    W, b ~ U(-1/sqrt(fan_in), 1/sqrt(fan_in)).
    Weights stored as (in_features, out_features) so forward is x @ W + b."""
    dims = [(512, 256), (256, 128), (128, 64), (64, 2)]
    params = []
    for (fan_in, fan_out) in dims:
        key, kw, kb = jax.random.split(key, 3)
        bound = 1.0 / jnp.sqrt(fan_in)
        w = jax.random.uniform(kw, (fan_in, fan_out), jnp.float32, -bound, bound)
        b = jax.random.uniform(kb, (fan_out,), jnp.float32, -bound, bound)
        params += [w, b]
    return tuple(params)


def reference_forward(output1, output2, params):
    """Plain-JAX reference with the exact PyTorch semantics (concat then MLP)."""
    w1, b1, w2, b2, w3, b3, w4, b4 = params
    x = jnp.concatenate([output1, output2], axis=1)
    x = jnp.maximum(x @ w1 + b1, 0.0)
    x = jnp.maximum(x @ w2 + b2, 0.0)
    x = jnp.maximum(x @ w3 + b3, 0.0)
    return x @ w4 + b4


if __name__ == "__main__":
    key = jax.random.PRNGKey(0)
    kp, k1, k2 = jax.random.split(key, 3)

    B = 8  # small batch; feature width (256 per input) is fixed by the module
    params = init_params(kp)
    output1 = jax.random.normal(k1, (B, 256), jnp.float32)
    output2 = jax.random.normal(k2, (B, 256), jnp.float32)

    out = compared_network_forward(output1, output2, params)
    out = jax.block_until_ready(out)

    ref = reference_forward(output1, output2, params)
    assert out.shape == (B, 2), out.shape
    # bf16 MXU feeds (f32 accumulation) -> slightly looser tolerance vs f32 ref.
    assert jnp.allclose(out, ref, atol=5e-2, rtol=5e-2), "mismatch vs reference"

    print("KERNEL_OK")
</pallas_src>

<mosaic_0001>
module attributes {stable_mosaic.version = 11 : i64} {
  func.func @compared_network_kernel(%arg0: i32, %arg1: memref<8x256xf32, #tpu.memory_space<vmem>>, %arg2: memref<8x256xf32, #tpu.memory_space<vmem>>, %arg3: memref<256x256xbf16, #tpu.memory_space<vmem>>, %arg4: memref<256x256xbf16, #tpu.memory_space<vmem>>, %arg5: memref<1x256xf32, #tpu.memory_space<vmem>>, %arg6: memref<256x128xbf16, #tpu.memory_space<vmem>>, %arg7: memref<1x128xf32, #tpu.memory_space<vmem>>, %arg8: memref<128x128xbf16, #tpu.memory_space<vmem>>, %arg9: memref<1x128xf32, #tpu.memory_space<vmem>>, %arg10: memref<128x8xbf16, #tpu.memory_space<vmem>>, %arg11: memref<1x8xf32, #tpu.memory_space<vmem>>, %arg12: memref<8x8xf32, #tpu.memory_space<vmem>>) attributes {dimension_semantics = [#tpu.dimension_semantics<parallel>], iteration_bounds = array<i64: 1>, scalar_prefetch = 0 : i64, scratch_operands = 0 : i64, tpu.core_type = #tpu.core_type<tc>, window_params = [{transform_indices = @transform_0, window_bounds = array<i64: 8, 256>}, {transform_indices = @transform_1, window_bounds = array<i64: 8, 256>}, {pipeline_mode = #tpu.pipeline_mode<synchronous>, transform_indices = @transform_2, window_bounds = array<i64: 256, 256>}, {pipeline_mode = #tpu.pipeline_mode<synchronous>, transform_indices = @transform_3, window_bounds = array<i64: 256, 256>}, {pipeline_mode = #tpu.pipeline_mode<synchronous>, transform_indices = @transform_4, window_bounds = array<i64: 1, 256>}, {pipeline_mode = #tpu.pipeline_mode<synchronous>, transform_indices = @transform_5, window_bounds = array<i64: 256, 128>}, {pipeline_mode = #tpu.pipeline_mode<synchronous>, transform_indices = @transform_6, window_bounds = array<i64: 1, 128>}, {pipeline_mode = #tpu.pipeline_mode<synchronous>, transform_indices = @transform_7, window_bounds = array<i64: 128, 128>}, {pipeline_mode = #tpu.pipeline_mode<synchronous>, transform_indices = @transform_8, window_bounds = array<i64: 1, 128>}, {pipeline_mode = #tpu.pipeline_mode<synchronous>, transform_indices = @transform_9, window_bounds = array<i64: 128, 8>}, {pipeline_mode = #tpu.pipeline_mode<synchronous>, transform_indices = @transform_10, window_bounds = array<i64: 1, 8>}, {transform_indices = @transform_11, window_bounds = array<i64: 8, 8>}]} {
    %c0 = arith.constant 0 : index
    %c0_0 = arith.constant 0 : index
    %0 = vector.load %arg1[%c0, %c0_0] : memref<8x256xf32, #tpu.memory_space<vmem>>, vector<8x256xf32>
    %1 = arith.truncf %0 : vector<8x256xf32> to vector<8x256xbf16>
    %c0_1 = arith.constant 0 : index
    %c0_2 = arith.constant 0 : index
    %2 = vector.load %arg2[%c0_1, %c0_2] : memref<8x256xf32, #tpu.memory_space<vmem>>, vector<8x256xf32>
    %3 = arith.truncf %2 : vector<8x256xf32> to vector<8x256xbf16>
    %c0_3 = arith.constant 0 : index
    %c0_4 = arith.constant 0 : index
    %4 = vector.load %arg3[%c0_3, %c0_4] : memref<256x256xbf16, #tpu.memory_space<vmem>>, vector<256x256xbf16>
    %cst = arith.constant dense<0.000000e+00> : vector<8x256xf32>
    %5 = tpu.matmul %1, %4, %cst {dimension_numbers = #tpu.dot_dimension_numbers<[1], [0], [0], [1], [0, 0, 1, 1], [], []>} : vector<8x256xbf16>, vector<256x256xbf16>, vector<8x256xf32> -> vector<8x256xf32>
    %c0_5 = arith.constant 0 : index
    %c0_6 = arith.constant 0 : index
    %6 = vector.load %arg4[%c0_5, %c0_6] : memref<256x256xbf16, #tpu.memory_space<vmem>>, vector<256x256xbf16>
    %cst_7 = arith.constant dense<0.000000e+00> : vector<8x256xf32>
    %7 = tpu.matmul %3, %6, %cst_7 {dimension_numbers = #tpu.dot_dimension_numbers<[1], [0], [0], [1], [0, 0, 1, 1], [], []>} : vector<8x256xbf16>, vector<256x256xbf16>, vector<8x256xf32> -> vector<8x256xf32>
    %8 = arith.addf %5, %7 : vector<8x256xf32>
    %c0_8 = arith.constant 0 : index
    %c0_9 = arith.constant 0 : index
    %9 = vector.load %arg5[%c0_8, %c0_9] : memref<1x256xf32, #tpu.memory_space<vmem>>, vector<1x256xf32>
    %10 = vector.broadcast %9 : vector<1x256xf32> to vector<8x256xf32>
    %11 = arith.addf %8, %10 : vector<8x256xf32>
    %cst_10 = arith.constant 0.000000e+00 : f32
    %12 = vector.broadcast %cst_10 : f32 to vector<8x256xf32>
    %13 = arith.maximumf %11, %12 : vector<8x256xf32>
    %14 = arith.truncf %13 : vector<8x256xf32> to vector<8x256xbf16>
    %c0_11 = arith.constant 0 : index
    %c0_12 = arith.constant 0 : index
    %15 = vector.load %arg6[%c0_11, %c0_12] : memref<256x128xbf16, #tpu.memory_space<vmem>>, vector<256x128xbf16>
    %cst_13 = arith.constant dense<0.000000e+00> : vector<8x128xf32>
    %16 = tpu.matmul %14, %15, %cst_13 {dimension_numbers = #tpu.dot_dimension_numbers<[1], [0], [0], [1], [0, 0, 1, 1], [], []>} : vector<8x256xbf16>, vector<256x128xbf16>, vector<8x128xf32> -> vector<8x128xf32>
    %c0_14 = arith.constant 0 : index
    %c0_15 = arith.constant 0 : index
    %17 = vector.load %arg7[%c0_14, %c0_15] : memref<1x128xf32, #tpu.memory_space<vmem>>, vector<1x128xf32>
    %18 = vector.broadcast %17 : vector<1x128xf32> to vector<8x128xf32>
    %19 = arith.addf %16, %18 : vector<8x128xf32>
    %cst_16 = arith.constant 0.000000e+00 : f32
    %20 = vector.broadcast %cst_16 : f32 to vector<8x128xf32>
    %21 = arith.maximumf %19, %20 : vector<8x128xf32>
    %22 = arith.truncf %21 : vector<8x128xf32> to vector<8x128xbf16>
    %c0_17 = arith.constant 0 : index
    %c0_18 = arith.constant 0 : index
    %23 = vector.load %arg8[%c0_17, %c0_18] : memref<128x128xbf16, #tpu.memory_space<vmem>>, vector<128x128xbf16>
    %cst_19 = arith.constant dense<0.000000e+00> : vector<8x128xf32>
    %24 = tpu.matmul %22, %23, %cst_19 {dimension_numbers = #tpu.dot_dimension_numbers<[1], [0], [0], [1], [0, 0, 1, 1], [], []>} : vector<8x128xbf16>, vector<128x128xbf16>, vector<8x128xf32> -> vector<8x128xf32>
    %c0_20 = arith.constant 0 : index
    %c0_21 = arith.constant 0 : index
    %25 = vector.load %arg9[%c0_20, %c0_21] : memref<1x128xf32, #tpu.memory_space<vmem>>, vector<1x128xf32>
    %26 = vector.broadcast %25 : vector<1x128xf32> to vector<8x128xf32>
    %27 = arith.addf %24, %26 : vector<8x128xf32>
    %cst_22 = arith.constant 0.000000e+00 : f32
    %28 = vector.broadcast %cst_22 : f32 to vector<8x128xf32>
    %29 = arith.maximumf %27, %28 : vector<8x128xf32>
    %30 = arith.truncf %29 : vector<8x128xf32> to vector<8x128xbf16>
    %c0_23 = arith.constant 0 : index
    %c0_24 = arith.constant 0 : index
    %31 = vector.load %arg10[%c0_23, %c0_24] : memref<128x8xbf16, #tpu.memory_space<vmem>>, vector<128x8xbf16>
    %cst_25 = arith.constant dense<0.000000e+00> : vector<8x8xf32>
    %32 = tpu.matmul %30, %31, %cst_25 {dimension_numbers = #tpu.dot_dimension_numbers<[1], [0], [0], [1], [0, 0, 1, 1], [], []>} : vector<8x128xbf16>, vector<128x8xbf16>, vector<8x8xf32> -> vector<8x8xf32>
    %c0_26 = arith.constant 0 : index
    %c0_27 = arith.constant 0 : index
    %33 = vector.load %arg11[%c0_26, %c0_27] : memref<1x8xf32, #tpu.memory_space<vmem>>, vector<1x8xf32>
    %34 = vector.broadcast %33 : vector<1x8xf32> to vector<8x8xf32>
    %35 = arith.addf %32, %34 : vector<8x8xf32>
    %c0_28 = arith.constant 0 : index
    %c0_29 = arith.constant 0 : index
    %36 = vector.load %arg12[%c0_28, %c0_29] : memref<8x8xf32, #tpu.memory_space<vmem>>, vector<8x8xf32>
    tpu.vector_store %arg12[%c0_28, %c0_29], %35 {strides = array<i32>} : memref<8x8xf32, #tpu.memory_space<vmem>>, vector<8x8xf32>,
    return
  }
  func.func @transform_0(%arg0: i32) -> (i32, i32) {
    %c0_i32 = arith.constant 0 : i32
    %c0_i32_0 = arith.constant 0 : i32
    return %arg0, %c0_i32 : i32, i32
  }
  func.func @transform_1(%arg0: i32) -> (i32, i32) {
    %c0_i32 = arith.constant 0 : i32
    %c0_i32_0 = arith.constant 0 : i32
    return %arg0, %c0_i32 : i32, i32
  }
  func.func @transform_2(%arg0: i32) -> (i32, i32) {
    %c0_i32 = arith.constant 0 : i32
    %c0_i32_0 = arith.constant 0 : i32
    %c0_i32_1 = arith.constant 0 : i32
    return %c0_i32, %c0_i32_0 : i32, i32
  }
  func.func @transform_3(%arg0: i32) -> (i32, i32) {
    %c0_i32 = arith.constant 0 : i32
    %c0_i32_0 = arith.constant 0 : i32
    %c0_i32_1 = arith.constant 0 : i32
    return %c0_i32, %c0_i32_0 : i32, i32
  }
  func.func @transform_4(%arg0: i32) -> (i32, i32) {
    %c0_i32 = arith.constant 0 : i32
    %c0_i32_0 = arith.constant 0 : i32
    %c0_i32_1 = arith.constant 0 : i32
    return %c0_i32, %c0_i32_0 : i32, i32
  }
  func.func @transform_5(%arg0: i32) -> (i32, i32) {
    %c0_i32 = arith.constant 0 : i32
    %c0_i32_0 = arith.constant 0 : i32
    %c0_i32_1 = arith.constant 0 : i32
    return %c0_i32, %c0_i32_0 : i32, i32
  }
  func.func @transform_6(%arg0: i32) -> (i32, i32) {
    %c0_i32 = arith.constant 0 : i32
    %c0_i32_0 = arith.constant 0 : i32
    %c0_i32_1 = arith.constant 0 : i32
    return %c0_i32, %c0_i32_0 : i32, i32
  }
  func.func @transform_7(%arg0: i32) -> (i32, i32) {
    %c0_i32 = arith.constant 0 : i32
    %c0_i32_0 = arith.constant 0 : i32
    %c0_i32_1 = arith.constant 0 : i32
    return %c0_i32, %c0_i32_0 : i32, i32
  }
  func.func @transform_8(%arg0: i32) -> (i32, i32) {
    %c0_i32 = arith.constant 0 : i32
    %c0_i32_0 = arith.constant 0 : i32
    %c0_i32_1 = arith.constant 0 : i32
    return %c0_i32, %c0_i32_0 : i32, i32
  }
  func.func @transform_9(%arg0: i32) -> (i32, i32) {
    %c0_i32 = arith.constant 0 : i32
    %c0_i32_0 = arith.constant 0 : i32
    %c0_i32_1 = arith.constant 0 : i32
    return %c0_i32, %c0_i32_0 : i32, i32
  }
  func.func @transform_10(%arg0: i32) -> (i32, i32) {
    %c0_i32 = arith.constant 0 : i32
    %c0_i32_0 = arith.constant 0 : i32
    %c0_i32_1 = arith.constant 0 : i32
    return %c0_i32, %c0_i32_0 : i32, i32
  }
  func.func @transform_11(%arg0: i32) -> (i32, i32) {
    %c0_i32 = arith.constant 0 : i32
    %c0_i32_0 = arith.constant 0 : i32
    return %arg0, %c0_i32 : i32, i32
  }
}

</mosaic_0001>

<bundles_post_ra>
// kernel: compared_network_forward.1
= control target key start
LH: loop header
LB: loop body
LE: loop exit
PB: predicated region body
PF: predicated region fallthrough
CT: control target
= control target key end

     0   :  { %vm1248_vm0 = vmmov 0   ;;  %vm932_vm1 = vcmask 64512   ;;  %s1642_s3 = inlined_call_operand.vmem [shape: bf16[256,256], index: 3, kind: input, shape index: {}]   ;;  %s1643_s2 = inlined_call_operand.vmem [shape: bf16[256,256], index: 2, kind: input, shape index: {}]   ;;  %s1644_s1 = inlined_call_operand.vmem [shape: f32[8,256], index: 1, kind: input, shape index: {}]   ;;  %s1645_s0 = inlined_call_operand.vmem [shape: f32[8,256], index: 0, kind: input, shape index: {}]   ;;  %s1646_s5 = inlined_call_operand.vmem [shape: bf16[256,128], index: 5, kind: input, shape index: {}]   ;;  %s1647_s7 = inlined_call_operand.vmem [shape: bf16[128,128], index: 7, kind: input, shape index: {}]   ;;  %s1648_s4 = inlined_call_operand.vmem [shape: f32[1,256], index: 4, kind: input, shape index: {}]   ;;  %s1649_s9 = inlined_call_operand.vmem [shape: bf16[128,8], index: 9, kind: input, shape index: {}]   ;;  %s1650_s6 = inlined_call_operand.vmem [shape: f32[1,128], index: 6, kind: input, shape index: {}]   ;;  %s1651_s8 = inlined_call_operand.vmem [shape: f32[1,128], index: 8, kind: input, shape index: {}]   ;;  %s1652_s10 = inlined_call_operand.vmem [shape: f32[1,8], index: 10, kind: input, shape index: {}]   ;;  %s1653_s11 = inlined_call_operand.vmem [shape: f32[8,8], index: 11, kind: output, shape index: {}]  }
   0x1   :  { %v1119_v0 = vld [vmem:[%s1642_s3 + $0x74] ss:$8 sps:$4 sm:$0xff]   ;;  %v1123_v2 = vld [vmem:[%s1642_s3 + $0x70] ss:$8 sps:$4 sm:$0xff]   ;;  %v1125_v4 = vld [vmem:[%s1642_s3 + $0x64] ss:$8 sps:$4 sm:$0xff]  }
   0x2   :  { %v1121_v1 = vld [vmem:[%s1643_s2 + $0x74] ss:$8 sps:$4 sm:$0xff]   ;;  %271 = vmatprep.subr.bf16.mxu0 %v1119_v0  ;;  %v1124_v3 = vld [vmem:[%s1643_s2 + $0x70] ss:$8 sps:$4 sm:$0xff]   ;;  %v1127_v5 = vld [vmem:[%s1643_s2 + $0x64] ss:$8 sps:$4 sm:$0xff]  }
   0x3   :  { %472 = vmatprep.subr.bf16.mxu1 %v1121_v1  ;;  %272 = vmatpush1.bf16.msra.mxu0 %v1123_v2  ;;  %v1129_v6 = vld [vmem:[%s1642_s3 + $0x60] ss:$8 sps:$4 sm:$0xff]   ;;  %v1131_v8 = vld [vmem:[%s1642_s3 + $0x54] ss:$8 sps:$4 sm:$0xff]   ;;  %v1135_v10 = vld [vmem:[%s1642_s3 + $0x50] ss:$8 sps:$4 sm:$0xff]  }
   0x4   :  { %473 = vmatpush1.bf16.msra.mxu1 %v1124_v3  ;;  %273 = vmatprep.subr.bf16.mxu0 %v1125_v4  ;;  %v1130_v7 = vld [vmem:[%s1643_s2 + $0x60] ss:$8 sps:$4 sm:$0xff]   ;;  %v1133_v9 = vld [vmem:[%s1643_s2 + $0x54] ss:$8 sps:$4 sm:$0xff]   ;;  %v1136_v11 = vld [vmem:[%s1643_s2 + $0x50] ss:$8 sps:$4 sm:$0xff]  }
   0x5   :  { %474 = vmatprep.subr.bf16.mxu1 %v1127_v5  ;;  %v1137_v12 = vld [vmem:[%s1642_s3 + $0x44] ss:$8 sps:$4 sm:$0xff]   ;;  %v1141_v14 = vld [vmem:[%s1642_s3 + $0x40] ss:$8 sps:$4 sm:$0xff]   ;;  %v1143_v16 = vld [vmem:[%s1642_s3 + $0x34] ss:$8 sps:$4 sm:$0xff]  }
   0x6   :  { %v1139_v13 = vld [vmem:[%s1643_s2 + $0x44] ss:$8 sps:$4 sm:$0xff]   ;;  %v1142_v15 = vld [vmem:[%s1643_s2 + $0x40] ss:$8 sps:$4 sm:$0xff]   ;;  %v1145_v17 = vld [vmem:[%s1643_s2 + $0x34] ss:$8 sps:$4 sm:$0xff]  }
   0x7   :  { %274 = vmatpush1.bf16.msra.mxu0 %v1129_v6  ;;  %v1147_v18 = vld [vmem:[%s1642_s3 + $0x30] ss:$8 sps:$4 sm:$0xff]   ;;  %v1149_v20 = vld [vmem:[%s1642_s3 + $0x24] ss:$8 sps:$4 sm:$0xff]   ;;  %v1153_v22 = vld [vmem:[%s1642_s3 + $0x20] ss:$8 sps:$4 sm:$0xff]  }
   0x8   :  { %475 = vmatpush1.bf16.msra.mxu1 %v1130_v7  ;;  %275 = vmatprep.subr.bf16.mxu0 %v1131_v8  ;;  %v1148_v19 = vld [vmem:[%s1643_s2 + $0x30] ss:$8 sps:$4 sm:$0xff]   ;;  %v1151_v21 = vld [vmem:[%s1643_s2 + $0x24] ss:$8 sps:$4 sm:$0xff]   ;;  %v1154_v23 = vld [vmem:[%s1643_s2 + $0x20] ss:$8 sps:$4 sm:$0xff]  }
   0x9   :  { %476 = vmatprep.subr.bf16.mxu1 %v1133_v9  ;;  %v1155_v24 = vld [vmem:[%s1642_s3 + $0x14] ss:$8 sps:$4 sm:$0xff]   ;;  %v1159_v26 = vld [vmem:[%s1642_s3 + $0x10] ss:$8 sps:$4 sm:$0xff]   ;;  %v1161_v28 = vld [vmem:[%s1642_s3 + $0x4] ss:$8 sps:$4 sm:$0xff]  }
   0xa   :  { %v1157_v25 = vld [vmem:[%s1643_s2 + $0x14] ss:$8 sps:$4 sm:$0xff]   ;;  %v1160_v27 = vld [vmem:[%s1643_s2 + $0x10] ss:$8 sps:$4 sm:$0xff]   ;;  %v1163_v29 = vld [vmem:[%s1643_s2 + $0x4] ss:$8 sps:$4 sm:$0xff]  }
   0xb   :  { %276 = vmatpush1.bf16.msra.mxu0 %v1135_v10  ;;  %v1165_v30 = vld [vmem:[%s1642_s3] ss:$8 sps:$4 sm:$0xff]   ;;  %v1167_v32 = vld [vmem:[%s1642_s3 + $0xf4] ss:$8 sps:$4 sm:$0xff]   ;;  %v1171_v34 = vld [vmem:[%s1642_s3 + $0xf0] ss:$8 sps:$4 sm:$0xff]  }
   0xc   :  { %477 = vmatpush1.bf16.msra.mxu1 %v1136_v11  ;;  %277 = vmatprep.subr.bf16.mxu0 %v1137_v12  ;;  %v1166_v31 = vld [vmem:[%s1643_s2] ss:$8 sps:$4 sm:$0xff]   ;;  %v1169_v33 = vld [vmem:[%s1643_s2 + $0xf4] ss:$8 sps:$4 sm:$0xff]   ;;  %v1172_v35 = vld [vmem:[%s1643_s2 + $0xf0] ss:$8 sps:$4 sm:$0xff]  }
   0xd   :  { %478 = vmatprep.subr.bf16.mxu1 %v1139_v13  ;;  %v1173_v36 = vld [vmem:[%s1642_s3 + $0xe4] ss:$8 sps:$4 sm:$0xff]   ;;  %v1177_v38 = vld [vmem:[%s1642_s3 + $0xe0] ss:$8 sps:$4 sm:$0xff]   ;;  %v1179_v40 = vld [vmem:[%s1642_s3 + $0xd4] ss:$8 sps:$4 sm:$0xff]  }
   0xe   :  { %v1175_v37 = vld [vmem:[%s1643_s2 + $0xe4] ss:$8 sps:$4 sm:$0xff]   ;;  %v1178_v39 = vld [vmem:[%s1643_s2 + $0xe0] ss:$8 sps:$4 sm:$0xff]   ;;  %v1181_v41 = vld [vmem:[%s1643_s2 + $0xd4] ss:$8 sps:$4 sm:$0xff]  }
   0xf   :  { %278 = vmatpush1.bf16.msra.mxu0 %v1141_v14  ;;  %v1183_v42 = vld [vmem:[%s1642_s3 + $0xd0] ss:$8 sps:$4 sm:$0xff]   ;;  %v1185_v44 = vld [vmem:[%s1642_s3 + $0xc4] ss:$8 sps:$4 sm:$0xff]   ;;  %v1189_v46 = vld [vmem:[%s1642_s3 + $0xc0] ss:$8 sps:$4 sm:$0xff]  }
  0x10   :  { %479 = vmatpush1.bf16.msra.mxu1 %v1142_v15  ;;  %279 = vmatprep.subr.bf16.mxu0 %v1143_v16  ;;  %v1184_v43 = vld [vmem:[%s1643_s2 + $0xd0] ss:$8 sps:$4 sm:$0xff]   ;;  %v1187_v45 = vld [vmem:[%s1643_s2 + $0xc4] ss:$8 sps:$4 sm:$0xff]   ;;  %v1190_v47 = vld [vmem:[%s1643_s2 + $0xc0] ss:$8 sps:$4 sm:$0xff]  }
  0x11   :  { %480 = vmatprep.subr.bf16.mxu1 %v1145_v17  ;;  %v44_v48 = vld [vmem:[%s1644_s1 + $0x8] sm:$0xff]  ;;  %v1191_v50 = vld [vmem:[%s1642_s3 + $0xb4] ss:$8 sps:$4 sm:$0xff]   ;;  %v1195_v54 = vld [vmem:[%s1642_s3 + $0xb0] ss:$8 sps:$4 sm:$0xff]  }
  0x12   :  { %v40_v49 = vld [vmem:[%s1645_s0 + $0x8] sm:$0xff]  ;;  %v46_v51 = vpack.c.bf16 %v44_v48, %v44_v48  ;;  %v1193_v53 = vld [vmem:[%s1643_s2 + $0xb4] ss:$8 sps:$4 sm:$0xff]   ;;  %v1196_v55 = vld [vmem:[%s1643_s2 + $0xb0] ss:$8 sps:$4 sm:$0xff]  }
  0x13   :  { %280 = vmatpush1.bf16.msra.mxu0 %v1147_v18  ;;  %v42_v52 = vpack.c.bf16 %v40_v49, %v40_v49  ;;  %v1197_v56 = vld [vmem:[%s1642_s3 + $0xa4] ss:$8 sps:$4 sm:$0xff]   ;;  %v1201_v58 = vld [vmem:[%s1642_s3 + $0xa0] ss:$8 sps:$4 sm:$0xff]   ;;  %v1203_v60 = vld [vmem:[%s1642_s3 + $0x94] ss:$8 sps:$4 sm:$0xff]  }
  0x14   :  { %481 = vmatpush1.bf16.msra.mxu1 %v1148_v19  ;;  %281 = vmatprep.subr.bf16.mxu0 %v1149_v20  ;;  %v1199_v57 = vld [vmem:[%s1643_s2 + $0xa4] ss:$8 sps:$4 sm:$0xff]   ;;  %v1202_v59 = vld [vmem:[%s1643_s2 + $0xa0] ss:$8 sps:$4 sm:$0xff]   ;;  %v1205_v61 = vld [vmem:[%s1643_s2 + $0x94] ss:$8 sps:$4 sm:$0xff]  }
  0x15   :  { %482 = vmatprep.subr.bf16.mxu1 %v1151_v21  ;;  %303 = vmatprep.mubr.bf16.mxu0 %v46_v51  ;;  %v1207_v62 = vld [vmem:[%s1642_s3 + $0x90] ss:$8 sps:$4 sm:$0xff]   ;;  %v1209_v0 = vld [vmem:[%s1642_s3 + $0x84] ss:$8 sps:$4 sm:$0xff]   ;;  %v1213_v2 = vld [vmem:[%s1642_s3 + $0x80] ss:$8 sps:$4 sm:$0xff]  }
  0x16   :  { %504 = vmatprep.mubr.bf16.mxu1 %v42_v52  ;;  %v1208_v63 = vld [vmem:[%s1643_s2 + $0x90] ss:$8 sps:$4 sm:$0xff]   ;;  %v1211_v1 = vld [vmem:[%s1643_s2 + $0x84] ss:$8 sps:$4 sm:$0xff]   ;;  %v1214_v3 = vld [vmem:[%s1643_s2 + $0x80] ss:$8 sps:$4 sm:$0xff]  }
  0x17   :  { %282 = vmatpush1.bf16.msra.mxu0 %v1153_v22  ;;  %v43_v4 = vld [vmem:[%s1644_s1] sm:$0xff]  ;;  %v1215_v6 = vld [vmem:[%s1646_s5 + $0x78] sm:$0xff]   ;;  %v1217_v10 = vld [vmem:[%s1646_s5 + $0x70] sm:$0xff]  }
  0x18   :  { %483 = vmatpush1.bf16.msra.mxu1 %v1154_v23  ;;  %283 = vmatprep.subr.bf16.mxu0 %v1155_v24  ;;  %v39_v5 = vld [vmem:[%s1645_s0] sm:$0xff]  ;;  %v45_v7 = vpack.c.bf16 %v43_v4, %v43_v4  ;;  %v1216_v9 = vld [vmem:[%s1646_s5 + $0x38] sm:$0xff]   ;;  %v1218_v11 = vld [vmem:[%s1646_s5 + $0x30] sm:$0xff]   ;;  %v1247_v24 = vmov 0.0  }
  0x19   :  { %484 = vmatprep.subr.bf16.mxu1 %v1157_v25  ;;  %v41_v8 = vpack.c.bf16 %v39_v5, %v39_v5  ;;  %v1219_v12 = vld [vmem:[%s1646_s5 + $0x68] sm:$0xff]   ;;  %v1221_v14 = vld [vmem:[%s1646_s5 + $0x60] sm:$0xff]   ;;  %v1223_v16 = vld [vmem:[%s1646_s5 + $0x58] sm:$0xff]  }
  0x1a   :  { %v1220_v13 = vld [vmem:[%s1646_s5 + $0x28] sm:$0xff]   ;;  %v1222_v15 = vld [vmem:[%s1646_s5 + $0x20] sm:$0xff]   ;;  %v1224_v17 = vld [vmem:[%s1646_s5 + $0x18] sm:$0xff]  }
  0x1b   :  { %284 = vmatpush1.bf16.msra.mxu0 %v1159_v26  ;;  %v1225_v18 = vld [vmem:[%s1646_s5 + $0x50] sm:$0xff]   ;;  %v1227_v20 = vld [vmem:[%s1646_s5 + $0x48] sm:$0xff]   ;;  %v1229_v22 = vld [vmem:[%s1646_s5 + $0x40] sm:$0xff]  }
  0x1c   :  { %485 = vmatpush1.bf16.msra.mxu1 %v1160_v27  ;;  %285 = vmatprep.subr.bf16.mxu0 %v1161_v28  ;;  %v1226_v19 = vld [vmem:[%s1646_s5 + $0x10] sm:$0xff]   ;;  %v1228_v21 = vld [vmem:[%s1646_s5 + $0x8] sm:$0xff]   ;;  %v1230_v23 = vld [vmem:[%s1646_s5] sm:$0xff]  }
  0x1d   :  { %486 = vmatprep.subr.bf16.mxu1 %v1163_v29  ;;  %v1231_v25 = vld [vmem:[%s1647_s7 + $0x38] sm:$0xff]   ;;  %v1232_v26 = vld [vmem:[%s1647_s7 + $0x30] sm:$0xff]   ;;  %v1233_v27 = vld [vmem:[%s1647_s7 + $0x28] sm:$0xff]  }
  0x1e   :  { %v1234_v28 = vld [vmem:[%s1647_s7 + $0x20] sm:$0xff]   ;;  %v1235_v29 = vld [vmem:[%s1647_s7 + $0x18] sm:$0xff]  }
  0x1f   :  { %286 = vmatpush1.bf16.msra.mxu0 %v1165_v30  ;;  %v515_v30 = vlaneseq }
  0x20   :  { %487 = vmatpush1.bf16.msra.mxu1 %v1166_v31  ;;  %287 = vmatprep.subr.bf16.mxu0 %v1167_v32 }
  0x21   :  { %488 = vmatprep.subr.bf16.mxu1 %v1169_v33  ;;  %v516_v31 = vshrl.u32 %v515_v30, 7  ;;  %v513_v33 = vld [vmem:[%s1648_s4] sm:$0x3] }
  0x23   :  { %288 = vmatpush2.bf16.msra.mxu0 %v1171_v34  ;;  %v517_v32 = vsub.s32 0, %v516_v31  ;;  %v521_v34 = vsub.s32 1, %v516_v31 }
  0x24   :  { %489 = vmatpush2.bf16.msra.mxu1 %v1172_v35  ;;  %289 = vmatprep.subr.bf16.mxu0 %v1173_v36 }
  0x25   :  { %490 = vmatprep.subr.bf16.mxu1 %v1175_v37  ;;  %v518_v35 = vrot.slane %v513_v33, %v517_v32 }
  0x27   :  { %290 = vmatpush2.bf16.msra.mxu0 %v1177_v38 }
  0x28   :  { %491 = vmatpush2.bf16.msra.mxu1 %v1178_v39  ;;  %291 = vmatprep.subr.bf16.mxu0 %v1179_v40  ;;  %v522_v39 = vrot.slane %v513_v33, %v521_v34 }
  0x29   :  { %492 = vmatprep.subr.bf16.mxu1 %v1181_v41 }
  0x2b   :  { %292 = vmatpush2.bf16.msra.mxu0 %v1183_v42 }
  0x2c   :  { %493 = vmatpush2.bf16.msra.mxu1 %v1184_v43  ;;  %293 = vmatprep.subr.bf16.mxu0 %v1185_v44 }
  0x2d   :  { %494 = vmatprep.subr.bf16.mxu1 %v1187_v45 }
  0x2f   :  { %294 = vmatpush2.bf16.msra.mxu0 %v1189_v46 }
  0x30   :  { %495 = vmatpush2.bf16.msra.mxu1 %v1190_v47  ;;  %295 = vmatprep.subr.bf16.mxu0 %v1191_v50 }
  0x31   :  { %496 = vmatprep.subr.bf16.mxu1 %v1193_v53  ;;  %v1236_v53 = vld [vmem:[%s1647_s7 + $0x10] sm:$0xff]  }
  0x33   :  { %296 = vmatpush2.bf16.msra.mxu0 %v1195_v54  ;;  %v1237_v54 = vld [vmem:[%s1647_s7 + $0x8] sm:$0xff]  }
  0x34   :  { %497 = vmatpush2.bf16.msra.mxu1 %v1196_v55  ;;  %297 = vmatprep.subr.bf16.mxu0 %v1197_v56  ;;  %v1238_v55 = vld [vmem:[%s1647_s7] sm:$0xff]   ;;  %v1239_v56 = vld [vmem:[%s1649_s9 + $0x38] sm:$0xff]  }
  0x35   :  { %498 = vmatprep.subr.bf16.mxu1 %v1199_v57  ;;  %v1240_v57 = vld [vmem:[%s1649_s9 + $0x30] sm:$0xff]  }
  0x37   :  { %298 = vmatpush2.bf16.msra.mxu0 %v1201_v58  ;;  %v1241_v58 = vld [vmem:[%s1649_s9 + $0x28] sm:$0xff]  }
  0x38   :  { %499 = vmatpush2.bf16.msra.mxu1 %v1202_v59  ;;  %299 = vmatprep.subr.bf16.mxu0 %v1203_v60  ;;  %v1242_v59 = vld [vmem:[%s1649_s9 + $0x20] sm:$0xff]   ;;  %v1243_v60 = vld [vmem:[%s1649_s9 + $0x18] sm:$0xff]  }
  0x39   :  { %500 = vmatprep.subr.bf16.mxu1 %v1205_v61  ;;  %v1244_v61 = vld [vmem:[%s1649_s9 + $0x10] sm:$0xff]  }
  0x3b   :  { %300 = vmatpush2.bf16.msra.mxu0 %v1207_v62 }
  0x3c   :  { %501 = vmatpush2.bf16.msra.mxu1 %v1208_v63  ;;  %301 = vmatprep.subr.bf16.mxu0 %v1209_v0  ;;  %v1002_v63 = vld [vmem:[%s1650_s6] ss:$0 sm:$0xff] }
  0x3d   :  { %502 = vmatprep.subr.bf16.mxu1 %v1211_v1 }
  0x3f   :  { %302 = vmatpush2.bf16.msra.mxu0 %v1213_v2 }
  0x40   :  { %503 = vmatpush2.bf16.msra.mxu1 %v1214_v3  ;;  %1037 = vmatprep.subr.bf16.mxu0 %v1215_v6 }
  0x41   :  { %1077 = vmatprep.subr.bf16.mxu1 %v1247_v24 }
  0x42   :  { %304 = vmatmul.mubr.bf16.vlgmr.msra.gmra.mxu0 %v45_v7  ;;  %v1245_v7 = vld [vmem:[%s1649_s9 + $0x8] sm:$0xff]  }
  0x43   :  { %505 = vmatmul.mubr.bf16.vlgmr.msra.gmra.mxu1 %v41_v8  ;;  %1038 = vmatpush3.bf16.msra.mxu0 %v1216_v9  ;;  %v1246_v8 = vld [vmem:[%s1649_s9] sm:$0xff]  }
  0x44   :  { %1039 = vmatprep.subr.bf16.mxu0 %v1217_v10  ;;  %1078 = vmatpush3.bf16.msra.mxu1 %v1231_v25  ;;  %v1019_v9 = vld [vmem:[%s1651_s8] ss:$0 sm:$0xff] }
  0x45   :  { %1079 = vmatprep.subr.bf16.mxu1 %v1247_v24  ;;  %1093 = vmatprep.mubr.msk.bf16.mxu1 %vm1248_vm0, %v1247_v24 }
  0x47   :  { %1040 = vmatpush3.bf16.msra.mxu0 %v1218_v11 }
  0x48   :  { %1041 = vmatprep.subr.bf16.mxu0 %v1219_v12  ;;  %1080 = vmatpush3.bf16.msra.mxu1 %v1232_v26 }
  0x49   :  { %1081 = vmatprep.subr.bf16.mxu1 %v1247_v24 }
  0x4b   :  { %1042 = vmatpush3.bf16.msra.mxu0 %v1220_v13 }
  0x4c   :  { %1043 = vmatprep.subr.bf16.mxu0 %v1221_v14  ;;  %1082 = vmatpush3.bf16.msra.mxu1 %v1233_v27 }
  0x4d   :  { %1083 = vmatprep.subr.bf16.mxu1 %v1247_v24 }
  0x4f   :  { %1044 = vmatpush3.bf16.msra.mxu0 %v1222_v15 }
  0x50   :  { %1045 = vmatprep.subr.bf16.mxu0 %v1223_v16  ;;  %1084 = vmatpush3.bf16.msra.mxu1 %v1234_v28 }
  0x51   :  { %1085 = vmatprep.subr.bf16.mxu1 %v1247_v24 }
  0x53   :  { %1046 = vmatpush3.bf16.msra.mxu0 %v1224_v17  ;;  %v1028_v17 = vld [vmem:[%s1652_s10] ss:$0 sm:$0xff] }
  0x54   :  { %1047 = vmatprep.subr.bf16.mxu0 %v1225_v18  ;;  %1086 = vmatpush3.bf16.msra.mxu1 %v1235_v29 }
  0x55   :  { %1087 = vmatprep.subr.bf16.mxu1 %v1247_v24 }
  0x57   :  { %1048 = vmatpush3.bf16.msra.mxu0 %v1226_v19 }
  0x58   :  { %1049 = vmatprep.subr.bf16.mxu0 %v1227_v20  ;;  %1088 = vmatpush3.bf16.msra.mxu1 %v1236_v53 }
  0x59   :  { %1089 = vmatprep.subr.bf16.mxu1 %v1247_v24 }
  0x5b   :  { %1050 = vmatpush3.bf16.msra.mxu0 %v1228_v21 }
  0x5c   :  { %1051 = vmatprep.subr.bf16.mxu0 %v1229_v22  ;;  %1090 = vmatpush3.bf16.msra.mxu1 %v1237_v54 }
  0x5d   :  { %1091 = vmatprep.subr.bf16.mxu1 %v1247_v24 }
  0x5f   :  { %1052 = vmatpush3.bf16.msra.mxu0 %v1230_v23 }
  0x60   :  { %1097 = vmatprep.subr.bf16.mxu0 %v1247_v24  ;;  %1092 = vmatpush3.bf16.msra.mxu1 %v1238_v55 }
 0x102   :  { %v305_v36 = vpop.f32.mrf.mxu0 }
 0x103   :  { %v506_v37 = vpop.f32.mrf.mxu1 }
 0x104   :  { %v507_v38 = vadd.f32 %v506_v37, %v305_v36  ;;  %v307_v40 = vpop.f32.mrf.mxu0 }
 0x105   :  { %v508_v41 = vpop.f32.mrf.mxu1 }
 0x106   :  { %v525_v42 = vadd.f32 %v518_v35, %v507_v38  ;;  %v509_v43 = vadd.f32 %v508_v41, %v307_v40  ;;  %v309_v44 = vpop.f32.mrf.mxu0 }
 0x107   :  { %v510_v45 = vpop.f32.mrf.mxu1 }
 0x108   :  { %v526_v46 = vadd.f32 %v522_v39, %v509_v43  ;;  %v527_v47 = vmax.f32 %v525_v42, 0.0  ;;  %v310_v48 = vpop.f32.mrf.mxu0 }
 0x109   :  { %v511_v49 = vpop.f32.mrf.mxu1 }
 0x10a   :  { %v528_v50 = vmax.f32 %v526_v46, 0.0  ;;  %v529_v52 = vpack.c.bf16 %v527_v47, %v527_v47 }
 0x10c   :  { %v530_v51 = vpack.c.bf16 %v528_v50, %v528_v50 }
 0x10e   :  { %698 = vmatprep.mubr.bf16.mxu0 %v530_v51 }
 0x10f   :  { %699 = vmatmul.mubr.bf16.vlgmr.msra.gmra.mxu0 %v529_v52 }
 0x110   :  { %1113 = vmatprep.mubr.msk.bf16.mxu0 %vm1248_vm0, %v1247_v24  ;;  %1098 = vmatpush3.bf16.msra.mxu0 %v1239_v56 }
 0x111   :  { %1099 = vmatprep.subr.bf16.mxu0 %v1247_v24 }
 0x114   :  { %1100 = vmatpush3.bf16.msra.mxu0 %v1240_v57 }
 0x115   :  { %1101 = vmatprep.subr.bf16.mxu0 %v1247_v24 }
 0x118   :  { %1102 = vmatpush3.bf16.msra.mxu0 %v1241_v58 }
 0x119   :  { %1103 = vmatprep.subr.bf16.mxu0 %v1247_v24 }
 0x11c   :  { %1104 = vmatpush3.bf16.msra.mxu0 %v1242_v59 }
 0x11d   :  { %1105 = vmatprep.subr.bf16.mxu0 %v1247_v24 }
 0x120   :  { %1106 = vmatpush3.bf16.msra.mxu0 %v1243_v60 }
 0x121   :  { %1107 = vmatprep.subr.bf16.mxu0 %v1247_v24 }
 0x124   :  { %1108 = vmatpush3.bf16.msra.mxu0 %v1244_v61 }
 0x125   :  { %1109 = vmatprep.subr.bf16.mxu0 %v1247_v24 }
 0x128   :  { %1110 = vmatpush3.bf16.msra.mxu0 %v1245_v7 }
 0x129   :  { %1111 = vmatprep.subr.bf16.mxu0 %v1247_v24 }
 0x12c   :  { %1112 = vmatpush3.bf16.msra.mxu0 %v1246_v8 }
 0x1cf   :  { %v1053_v62 = vpop.f32.mrf.mxu0 }
 0x1d1   :  { %v1054_v0 = vpop.f32.mrf.mxu0 }
 0x1d2   :  { %v1055_v1 = vadd.f32 %v1054_v0, %v1053_v62 }
 0x1d3   :  { %v1056_v2 = vpop.f32.mrf.mxu0 }
 0x1d4   :  { %v701_v3 = vadd.f32 %v1055_v1, %v1002_v63 }
 0x1d5   :  { %v1057_v4 = vpop.f32.mrf.mxu0 }
 0x1d6   :  { %v706_v5 = vmax.f32 %v701_v3, 0.0 }
 0x1d8   :  { %v707_v6 = vpack.c.bf16 %v706_v5, %v706_v5 }
 0x1da   :  { %1094 = vmatmul.mubr.bf16.vlgmr.msra.gmra.mxu1 %v707_v6 }
 0x29a   :  { %v813_v10 = vpop.f32.mrf.mxu1 }
 0x29b   :  { %v814_v11 = vadd.f32 %v1019_v9, %v813_v10 }
 0x29c   :  { %v1095_v12 = vpop.f32.mrf.mxu1 }
 0x29d   :  { %v819_v13 = vmax.f32 %v814_v11, 0.0 }
 0x29e   :  { %v816_v14 = vpop.f32.mrf.mxu1 }
 0x29f   :  { %v820_v15 = vpack.c.bf16 %v819_v13, %v819_v13 }
 0x2a0   :  { %v1096_v16 = vpop.f32.mrf.mxu1 }
 0x2a1   :  { %1114 = vmatmul.mubr.bf16.vlgmr.msra.gmra.mxu0 %v820_v15 }
 0x361   :  { %v926_v18 = vpop.f32.mrf.mxu0 }
 0x362   :  { %v927_v19 = vadd.f32 %v1028_v17, %v926_v18 }
 0x363   :  { %v1115_v20 = vpop.f32.mrf.mxu0 }
 0x364   :  { %933 = vst.msk [vmem:[%s1653_s11] sm:$0xff] %vm932_vm1, %v927_v19 }
 0x365   :  { %v929_v21 = vpop.f32.mrf.mxu0 }
 0x367   :  { %v1116_v22 = vpop.f32.mrf.mxu0 }

</bundles_post_ra>
